<compile_context>
chip_gen: v7x
topology: tpu7x:2x2x1
jax: 0.10.0
libtpu: 0.0.40
codegen_flags: <defaults>
</compile_context>

<pallas_src>
import functools

import jax
import jax.numpy as jnp
from jax.experimental import pallas as pl
from jax.experimental.pallas import tpu as pltpu

LANES = 128  # padded lane width for all hidden layers / fused head output


def _round_up(x, m):
    return (x + m - 1) // m * m


# ----------------------------- Pallas kernel -------------------------------
def dueling_dqn_kernel(x_ref, w0_ref, ws_ref, b_ref, out_ref):
    """One batch tile through the whole network: 4 lane-dense MXU matmuls."""
    cd = w0_ref.dtype  # matmul operand dtype (f32 or bf16); accumulation is f32

    # fake_conv layer 0: Linear(in_dim, H0) + ReLU   (output padded to 128 lanes)
    h = jnp.dot(x_ref[...], w0_ref[...], preferred_element_type=jnp.float32)
    h = jnp.maximum(h + b_ref[0:1, :], 0.0)

    # fake_conv layer 1 (main_stream): Linear(H0, H1) + ReLU
    h = jnp.dot(h.astype(cd), ws_ref[0], preferred_element_type=jnp.float32)
    h = jnp.maximum(h + b_ref[1:2, :], 0.0)

    # fused value|advantage hidden: Linear(H1, HV+HA) + ReLU  (one matmul)
    h = jnp.dot(h.astype(cd), ws_ref[1], preferred_element_type=jnp.float32)
    h = jnp.maximum(h + b_ref[2:3, :], 0.0)

    # fused block-diagonal head -> [V | A | zero-pad], lane-dense (TB, 128)
    out = jnp.dot(h.astype(cd), ws_ref[2], preferred_element_type=jnp.float32)
    out_ref[...] = (out + b_ref[3:4, :]).astype(out_ref.dtype)


# ------------------------------- wrapper ------------------------------------
@functools.partial(jax.jit, static_argnames=("n_actions",))
def dueling_dqn_forward(state, fused_params, *, n_actions):
    """state: (B, in_dim). Returns (V, A) with shapes (B, 1), (B, n_actions)."""
    w0, ws, bpack = fused_params
    B, in_dim = state.shape
    compute_dtype = w0.dtype

    # Batch tiling: tile up to 512 rows, pad B to a multiple of the tile.
    TB = min(512, _round_up(B, 8))
    B_pad = _round_up(B, TB)
    x = state.astype(compute_dtype)
    if B_pad != B:
        x = jnp.pad(x, ((0, B_pad - B), (0, 0)))

    flops = 2 * B_pad * (in_dim * LANES + 3 * LANES * LANES)
    bytes_accessed = (
        x.size * x.dtype.itemsize
        + sum(p.size * p.dtype.itemsize for p in fused_params)
        + B_pad * LANES * 4
    )

    out = pl.pallas_call(
        dueling_dqn_kernel,
        out_shape=jax.ShapeDtypeStruct((B_pad, LANES), jnp.float32),
        grid=(B_pad // TB,),
        in_specs=[
            pl.BlockSpec((TB, in_dim), lambda i: (i, 0)),   # state tile
            pl.BlockSpec(w0.shape, lambda i: (0, 0)),       # (in_dim, 128)   resident
            pl.BlockSpec(ws.shape, lambda i: (0, 0, 0)),    # (3, 128, 128)   resident
            pl.BlockSpec(bpack.shape, lambda i: (0, 0)),    # (4, 128)        resident
        ],
        out_specs=pl.BlockSpec((TB, LANES), lambda i: (i, 0)),
        compiler_params=pltpu.CompilerParams(
            dimension_semantics=("parallel",)),
        cost_estimate=pl.CostEstimate(
            flops=flops, transcendentals=0, bytes_accessed=bytes_accessed),
    )(x, w0, ws, bpack)

    out = out[:B]
    V = out[:, 0:1]
    A = out[:, 1:1 + n_actions]
    return V, A


# --------------------------- parameter handling ------------------------------
def init_params(key, in_dim, h0, h1, hv, ha, n_actions):
    """Raw (PyTorch-layout) params. Weights are (in, out); biases are (out,)."""
    shapes = [
        (in_dim, h0), (h0,),            # fake_conv layer 0
        (h0, h1), (h1,),                # fake_conv layer 1 (main_stream)
        (h1, hv), (hv,),                # value stream hidden
        (hv, 1), (1,),                  # value head
        (h1, ha), (ha,),                # advantage stream hidden
        (ha, n_actions), (n_actions,),  # advantage head
    ]
    keys = jax.random.split(key, len(shapes))
    params = []
    for k, shp in zip(keys, shapes):
        fan_in = shp[0]
        scale = 1.0 / jnp.sqrt(jnp.float32(max(fan_in, 1)))
        params.append(jax.random.uniform(k, shp, jnp.float32, -scale, scale))
    return tuple(params)


def pack_params(raw_params, n_actions, compute_dtype=jnp.float32):
    """Fuse value/advantage weights, zero-pad every layer to 128 lanes, stack."""
    (w0, b0, w1, b1, wv1, bv1, wv2, bv2, wa1, ba1, wa2, ba2) = raw_params
    in_dim, H0 = w0.shape
    H1 = w1.shape[1]
    HV, HA = wv1.shape[1], wa1.shape[1]
    HVA = HV + HA
    assert max(H0, H1, HVA, 1 + n_actions) <= LANES

    # Layer 0 weight: (in_dim, 128).
    w0p = jnp.zeros((in_dim, LANES), jnp.float32).at[:, :H0].set(w0)
    # Layer 1 weight: (128, 128).
    w1p = jnp.zeros((LANES, LANES), jnp.float32).at[:H0, :H1].set(w1)
    # Fused value|advantage hidden weight: (128, 128) with columns [V-hid | A-hid].
    wvap = (jnp.zeros((LANES, LANES), jnp.float32)
            .at[:H1, :HV].set(wv1)
            .at[:H1, HV:HVA].set(wa1))
    # Fused block-diagonal head: column 0 = V, columns 1:1+n_actions = A.
    whp = (jnp.zeros((LANES, LANES), jnp.float32)
           .at[:HV, 0:1].set(wv2)
           .at[HV:HVA, 1:1 + n_actions].set(wa2))
    ws = jnp.stack([w1p, wvap, whp], axis=0)  # (3, 128, 128)

    # Bias pack (kept f32 regardless of compute dtype; added post-accumulation).
    bpack = jnp.zeros((4, LANES), jnp.float32)
    bpack = bpack.at[0, :H0].set(b0)
    bpack = bpack.at[1, :H1].set(b1)
    bpack = bpack.at[2, :HV].set(bv1).at[2, HV:HVA].set(ba1)
    bpack = bpack.at[3, 0].set(bv2[0]).at[3, 1:1 + n_actions].set(ba2)

    cd = compute_dtype
    return (w0p.astype(cd), ws.astype(cd), bpack)


# ------------------------ pure-JAX reference (check) -------------------------
def reference_forward(state, raw_params):
    (w0, b0, w1, b1, wv1, bv1, wv2, bv2, wa1, ba1, wa2, ba2) = raw_params
    h0 = jnp.maximum(state @ w0 + b0, 0.0)
    res = jnp.maximum(h0 @ w1 + b1, 0.0)
    hv = jnp.maximum(res @ wv1 + bv1, 0.0)
    V = hv @ wv2 + bv2
    ha = jnp.maximum(res @ wa1 + ba1, 0.0)
    A = ha @ wa2 + ba2
    return V, A


# TODO(synk): checkpoint save/load, Adam optimizer and MSE loss from the
# original module are host-side training utilities, not part of forward.

if __name__ == "__main__":
    B, IN_DIM = 2, 8
    H0, H1 = 32, 64          # fake_conv hidden sizes
    HV, HA = 32, 32          # value / advantage stream hidden sizes
    N_ACTIONS = 6

    key = jax.random.PRNGKey(0)
    k_x, k_p, k_big = jax.random.split(key, 3)
    state = jax.random.normal(k_x, (B, IN_DIM), jnp.float32)
    raw = init_params(k_p, IN_DIM, H0, H1, HV, HA, N_ACTIONS)

    # --- f32 path (exact match with reference) ---
    fused_f32 = pack_params(raw, N_ACTIONS, jnp.float32)
    V, A = dueling_dqn_forward(state, fused_f32, n_actions=N_ACTIONS)
    jax.block_until_ready((V, A))
    V_ref, A_ref = reference_forward(state, raw)
    assert V.shape == (B, 1) and A.shape == (B, N_ACTIONS)
    assert jnp.allclose(V, V_ref, atol=1e-5, rtol=1e-5)
    assert jnp.allclose(A, A_ref, atol=1e-5, rtol=1e-5)

    # --- larger batch exercising the tiling + padding path ---
    B_big = 300
    state_big = jax.random.normal(k_big, (B_big, IN_DIM), jnp.float32)
    Vb, Ab = dueling_dqn_forward(state_big, fused_f32, n_actions=N_ACTIONS)
    jax.block_until_ready((Vb, Ab))
    Vb_ref, Ab_ref = reference_forward(state_big, raw)
    assert Vb.shape == (B_big, 1) and Ab.shape == (B_big, N_ACTIONS)
    assert jnp.allclose(Vb, Vb_ref, atol=1e-5, rtol=1e-5)
    assert jnp.allclose(Ab, Ab_ref, atol=1e-5, rtol=1e-5)

    # --- bf16 operand path (v6e/v7x MXU fast path; f32 accumulation) ---
    fused_bf16 = pack_params(raw, N_ACTIONS, jnp.bfloat16)
    V16, A16 = dueling_dqn_forward(state, fused_bf16, n_actions=N_ACTIONS)
    jax.block_until_ready((V16, A16))
    assert jnp.allclose(V16, V_ref, atol=5e-2, rtol=5e-2)
    assert jnp.allclose(A16, A_ref, atol=5e-2, rtol=5e-2)

    print("KERNEL_OK")
</pallas_src>

<mosaic_0001>
module attributes {stable_mosaic.version = 11 : i64} {
  func.func @dueling_dqn_kernel(%arg0: i32, %arg1: memref<8x8xf32, #tpu.memory_space<vmem>>, %arg2: memref<8x128xf32, #tpu.memory_space<vmem>>, %arg3: memref<3x128x128xf32, #tpu.memory_space<vmem>>, %arg4: memref<4x128xf32, #tpu.memory_space<vmem>>, %arg5: memref<8x128xf32, #tpu.memory_space<vmem>>) attributes {dimension_semantics = [#tpu.dimension_semantics<parallel>], iteration_bounds = array<i64: 1>, scalar_prefetch = 0 : i64, scratch_operands = 0 : i64, tpu.core_type = #tpu.core_type<tc>, window_params = [{transform_indices = @transform_0, window_bounds = array<i64: 8, 8>}, {pipeline_mode = #tpu.pipeline_mode<synchronous>, transform_indices = @transform_1, window_bounds = array<i64: 8, 128>}, {pipeline_mode = #tpu.pipeline_mode<synchronous>, transform_indices = @transform_2, window_bounds = array<i64: 3, 128, 128>}, {pipeline_mode = #tpu.pipeline_mode<synchronous>, transform_indices = @transform_3, window_bounds = array<i64: 4, 128>}, {transform_indices = @transform_4, window_bounds = array<i64: 8, 128>}]} {
    %c0 = arith.constant 0 : index
    %c0_0 = arith.constant 0 : index
    %0 = vector.load %arg1[%c0, %c0_0] : memref<8x8xf32, #tpu.memory_space<vmem>>, vector<8x8xf32>
    %c0_1 = arith.constant 0 : index
    %c0_2 = arith.constant 0 : index
    %1 = vector.load %arg2[%c0_1, %c0_2] : memref<8x128xf32, #tpu.memory_space<vmem>>, vector<8x128xf32>
    %cst = arith.constant dense<0.000000e+00> : vector<8x128xf32>
    %2 = tpu.matmul %0, %1, %cst {dimension_numbers = #tpu.dot_dimension_numbers<[1], [0], [0], [1], [0, 0, 1, 1], [], []>} : vector<8x8xf32>, vector<8x128xf32>, vector<8x128xf32> -> vector<8x128xf32>
    %c0_3 = arith.constant 0 : index
    %c0_4 = arith.constant 0 : index
    %3 = vector.load %arg4[%c0_3, %c0_4] : memref<4x128xf32, #tpu.memory_space<vmem>>, vector<1x128xf32>
    %4 = vector.broadcast %3 : vector<1x128xf32> to vector<8x128xf32>
    %5 = arith.addf %2, %4 : vector<8x128xf32>
    %cst_5 = arith.constant 0.000000e+00 : f32
    %6 = vector.broadcast %cst_5 : f32 to vector<8x128xf32>
    %7 = arith.maximumf %5, %6 : vector<8x128xf32>
    %c0_6 = arith.constant 0 : index
    %c0_7 = arith.constant 0 : index
    %c0_8 = arith.constant 0 : index
    %8 = vector.load %arg3[%c0_6, %c0_7, %c0_8] : memref<3x128x128xf32, #tpu.memory_space<vmem>>, vector<1x128x128xf32>
    %9 = vector.shape_cast %8 : vector<1x128x128xf32> to vector<128x128xf32>
    %cst_9 = arith.constant dense<0.000000e+00> : vector<8x128xf32>
    %10 = tpu.matmul %7, %9, %cst_9 {dimension_numbers = #tpu.dot_dimension_numbers<[1], [0], [0], [1], [0, 0, 1, 1], [], []>} : vector<8x128xf32>, vector<128x128xf32>, vector<8x128xf32> -> vector<8x128xf32>
    %c1 = arith.constant 1 : index
    %c0_10 = arith.constant 0 : index
    %11 = vector.load %arg4[%c1, %c0_10] : memref<4x128xf32, #tpu.memory_space<vmem>>, vector<1x128xf32>
    %12 = vector.broadcast %11 : vector<1x128xf32> to vector<8x128xf32>
    %13 = arith.addf %10, %12 : vector<8x128xf32>
    %cst_11 = arith.constant 0.000000e+00 : f32
    %14 = vector.broadcast %cst_11 : f32 to vector<8x128xf32>
    %15 = arith.maximumf %13, %14 : vector<8x128xf32>
    %c1_12 = arith.constant 1 : index
    %c0_13 = arith.constant 0 : index
    %c0_14 = arith.constant 0 : index
    %16 = vector.load %arg3[%c1_12, %c0_13, %c0_14] : memref<3x128x128xf32, #tpu.memory_space<vmem>>, vector<1x128x128xf32>
    %17 = vector.shape_cast %16 : vector<1x128x128xf32> to vector<128x128xf32>
    %cst_15 = arith.constant dense<0.000000e+00> : vector<8x128xf32>
    %18 = tpu.matmul %15, %17, %cst_15 {dimension_numbers = #tpu.dot_dimension_numbers<[1], [0], [0], [1], [0, 0, 1, 1], [], []>} : vector<8x128xf32>, vector<128x128xf32>, vector<8x128xf32> -> vector<8x128xf32>
    %c2 = arith.constant 2 : index
    %c0_16 = arith.constant 0 : index
    %19 = vector.load %arg4[%c2, %c0_16] : memref<4x128xf32, #tpu.memory_space<vmem>>, vector<1x128xf32>
    %20 = vector.broadcast %19 : vector<1x128xf32> to vector<8x128xf32>
    %21 = arith.addf %18, %20 : vector<8x128xf32>
    %cst_17 = arith.constant 0.000000e+00 : f32
    %22 = vector.broadcast %cst_17 : f32 to vector<8x128xf32>
    %23 = arith.maximumf %21, %22 : vector<8x128xf32>
    %c2_18 = arith.constant 2 : index
    %c0_19 = arith.constant 0 : index
    %c0_20 = arith.constant 0 : index
    %24 = vector.load %arg3[%c2_18, %c0_19, %c0_20] : memref<3x128x128xf32, #tpu.memory_space<vmem>>, vector<1x128x128xf32>
    %25 = vector.shape_cast %24 : vector<1x128x128xf32> to vector<128x128xf32>
    %cst_21 = arith.constant dense<0.000000e+00> : vector<8x128xf32>
    %26 = tpu.matmul %23, %25, %cst_21 {dimension_numbers = #tpu.dot_dimension_numbers<[1], [0], [0], [1], [0, 0, 1, 1], [], []>} : vector<8x128xf32>, vector<128x128xf32>, vector<8x128xf32> -> vector<8x128xf32>
    %c3 = arith.constant 3 : index
    %c0_22 = arith.constant 0 : index
    %27 = vector.load %arg4[%c3, %c0_22] : memref<4x128xf32, #tpu.memory_space<vmem>>, vector<1x128xf32>
    %28 = vector.broadcast %27 : vector<1x128xf32> to vector<8x128xf32>
    %29 = arith.addf %26, %28 : vector<8x128xf32>
    %c0_23 = arith.constant 0 : index
    %c0_24 = arith.constant 0 : index
    %30 = vector.load %arg5[%c0_23, %c0_24] : memref<8x128xf32, #tpu.memory_space<vmem>>, vector<8x128xf32>
    tpu.vector_store %arg5[%c0_23, %c0_24], %29 {strides = array<i32>} : memref<8x128xf32, #tpu.memory_space<vmem>>, vector<8x128xf32>,
    return
  }
  func.func @transform_0(%arg0: i32) -> (i32, i32) {
    %c0_i32 = arith.constant 0 : i32
    %c0_i32_0 = arith.constant 0 : i32
    return %arg0, %c0_i32 : i32, i32
  }
  func.func @transform_1(%arg0: i32) -> (i32, i32) {
    %c0_i32 = arith.constant 0 : i32
    %c0_i32_0 = arith.constant 0 : i32
    %c0_i32_1 = arith.constant 0 : i32
    return %c0_i32, %c0_i32_0 : i32, i32
  }
  func.func @transform_2(%arg0: i32) -> (i32, i32, i32) {
    %c0_i32 = arith.constant 0 : i32
    %c0_i32_0 = arith.constant 0 : i32
    %c0_i32_1 = arith.constant 0 : i32
    %c0_i32_2 = arith.constant 0 : i32
    return %c0_i32, %c0_i32_0, %c0_i32_1 : i32, i32, i32
  }
  func.func @transform_3(%arg0: i32) -> (i32, i32) {
    %c0_i32 = arith.constant 0 : i32
    %c0_i32_0 = arith.constant 0 : i32
    %c0_i32_1 = arith.constant 0 : i32
    return %c0_i32, %c0_i32_0 : i32, i32
  }
  func.func @transform_4(%arg0: i32) -> (i32, i32) {
    %c0_i32 = arith.constant 0 : i32
    %c0_i32_0 = arith.constant 0 : i32
    return %arg0, %c0_i32 : i32, i32
  }
}

</mosaic_0001>

<bundles_post_ra>
// kernel: dueling_dqn_forward.1
= control target key start
LH: loop header
LB: loop body
LE: loop exit
PB: predicated region body
PF: predicated region fallthrough
CT: control target
= control target key end

     0   :  { %9 = vsyncpa [#allocation3], 0  ;;  %s666_s15 = smov [#allocation2]   ;;  %s763_s0 = inlined_call_operand.vmem [shape: f32[8,8], index: 0, kind: input, shape index: {}]   ;;  %s764_s1 = inlined_call_operand.vmem [shape: f32[8,128], index: 1, kind: input, shape index: {}]   ;;  %s765_s2 = inlined_call_operand.hbm [shape: f32[3,128,128], index: 2, kind: input, shape index: {}]   ;;  %s766_s3 = inlined_call_operand.vmem [shape: f32[4,128], index: 3, kind: input, shape index: {}]   ;;  %s767_s4 = inlined_call_operand.vmem [shape: f32[8,128], index: 4, kind: output, shape index: {}]  }
   0x1   :  { %s19_s16 = sshll.u32 %s666_s15, 4  ;;  %s642_s19 = scalar_lea.hbm %s765_s2, 6144  ;;  %s20_s16 = int_to_ptr.vmem [resolvable:$true] %s19_s16 }
   0x2   :  { %p643_p0 = scmp.ne.s32.totalorder %s765_s2, %s642_s19  ;;  %p646_p1 = scmp.lt.u32.totalorder %s642_s19, %s765_s2 }
   0x4   :  { %p648_p2 = pnand %p646_p1, %p643_p0 }
   0x6   :  { %651 = shalt.err (!%p648_p2)
}
   0x7   :  { %s652_s24 = scalar_lea.vmem %s20_s16, 6144  ;;  %p657_p4 = scmp.lt.s32.totalorder %s20_s16, %s20_s16 }
   0x8   :  { %p653_p3 = scmp.ne.s32.totalorder %s20_s16, %s652_s24  ;;  %p658_p5 = scmp.lt.s32.totalorder %s652_s24, %s652_s24 }
   0xa   :  { %p659_p6 = por %p658_p5, %p657_p4 }
   0xc   :  { %p660_p7 = pnand %p659_p6, %p653_p3 }
   0xe   :  { %663 = shalt.err (!%p660_p7)
}
   0xf   :  { %s667_s25 = smov 128   ;;  %s668_s26 = smov 8  }
  0x10   :  { %25 = dma.hbm_to_vmem [thread:$0]  %s765_s2, 6144, %s20_s16, [#allocation3], %s667_s25, %s667_s25, %s668_s26  }
  0x11   :  { %664 = dma.done.wait [#allocation3], 6144  }
  0x12   :  { %665 = vsyncadd [#allocation3], 4294961152  ;;  %v669_v0 = vmov 0.0   ;;  %vm670_vm0 = vmmov 0   ;;  %v671_v1 = vmov 0.0|0.0   ;;  %vm38_vm1 = vcmask 64512  }
  0x13   :  { %454 = vmatprep.subr.mxu0 %v669_v0  ;;  %456 = vmatprep.mubr.msk.f32.mxu0 %vm670_vm0, %v669_v0  ;;  %v32_v2 = vld [vmem:[%s764_s1] sm:$0xff]  ;;  %v114_v5 = vld [vmem:[#allocation2 + $0x8] sm:$0xff]  ;;  %v115_v6 = vld [vmem:[#allocation2 + $0x10] sm:$0xff] }
  0x14   :  { %564 = vmatprep.subr.bf16.mxu1 %v671_v1  ;;  %491 = vmatprep.mubr.msk.f32.mxu1 %vm670_vm0, %v669_v0  ;;  %v31_v3 = vld [vmem:[%s763_s0] sm:$0xff]  ;;  %v116_v7 = vld [vmem:[#allocation2 + $0x18] sm:$0xff]  ;;  %v118_v11 = vld [vmem:[#allocation2 + $0x28] sm:$0xff] }
  0x15   :  { %v113_v4 = vld [vmem:[#allocation2] sm:$0xff]  ;;  %455 = vmatpush3.msra.mxu0 %v32_v2  ;;  %v568_v9 = vpack.c.bf16 %v116_v7, %v115_v6  ;;  %v119_v13 = vld [vmem:[#allocation2 + $0x30] sm:$0xff]  ;;  %v120_v14 = vld [vmem:[#allocation2 + $0x38] sm:$0xff] }
  0x16   :  { %457 = vmatmul.mubr.msk.f32.vlgmr.msra.gmra.mrb[0].mxu0 %vm38_vm1, %v31_v3  ;;  %v565_v8 = vpack.c.bf16 %v114_v5, %v113_v4  ;;  %588 = vmatprep.subr.bf16.mxu0 %v671_v1  ;;  %v117_v10 = vld [vmem:[#allocation2 + $0x20] sm:$0xff]  ;;  %v574_v15 = vpack.c.bf16 %v120_v14, %v119_v13  ;;  %v122_v17 = vld [vmem:[#allocation2 + $0x48] sm:$0xff]  ;;  %v123_v19 = vld [vmem:[#allocation2 + $0x50] sm:$0xff] }
  0x17   :  { %526 = vmatprep.mubr.msk.f32.mxu0 %vm670_vm0, %v669_v0  ;;  %v571_v12 = vpack.c.bf16 %v118_v11, %v117_v10  ;;  %v121_v16 = vld [vmem:[#allocation2 + $0x40] sm:$0xff]  ;;  %v124_v20 = vld [vmem:[#allocation2 + $0x58] sm:$0xff]  ;;  %v126_v23 = vld [vmem:[#allocation2 + $0x68] sm:$0xff] }
  0x18   :  { %566 = vmatpush3.bf16.msra.mxu1 %v565_v8  ;;  %v577_v18 = vpack.c.bf16 %v122_v17, %v121_v16  ;;  %v580_v21 = vpack.c.bf16 %v124_v20, %v123_v19  ;;  %v125_v22 = vld [vmem:[#allocation2 + $0x60] sm:$0xff]  ;;  %v127_v25 = vld [vmem:[#allocation2 + $0x70] sm:$0xff]  ;;  %v128_v26 = vld [vmem:[#allocation2 + $0x78] sm:$0xff] }
  0x19   :  { %567 = vmatprep.subr.bf16.mxu1 %v671_v1  ;;  %v583_v24 = vpack.c.bf16 %v126_v23, %v125_v22  ;;  %v586_v27 = vpack.c.bf16 %v128_v26, %v127_v25  ;;  %v206_v28 = vld [vmem:[#allocation2 + $0x80] sm:$0xff]  ;;  %v207_v29 = vld [vmem:[#allocation2 + $0x88] sm:$0xff]  ;;  %v208_v30 = vld [vmem:[#allocation2 + $0x90] sm:$0xff] }
  0x1a   :  { %v589_v31 = vpack.c.bf16 %v207_v29, %v206_v28  ;;  %v209_v32 = vld [vmem:[#allocation2 + $0x98] sm:$0xff]  ;;  %v210_v34 = vld [vmem:[#allocation2 + $0xa0] sm:$0xff]  ;;  %v211_v35 = vld [vmem:[#allocation2 + $0xa8] sm:$0xff] }
  0x1b   :  { %v592_v33 = vpack.c.bf16 %v209_v32, %v208_v30  ;;  %v595_v36 = vpack.c.bf16 %v211_v35, %v210_v34  ;;  %v212_v37 = vld [vmem:[#allocation2 + $0xb0] sm:$0xff]  ;;  %v213_v38 = vld [vmem:[#allocation2 + $0xb8] sm:$0xff]  ;;  %v214_v40 = vld [vmem:[#allocation2 + $0xc0] sm:$0xff] }
  0x1c   :  { %569 = vmatpush3.bf16.msra.mxu1 %v568_v9  ;;  %590 = vmatpush3.bf16.msra.mxu0 %v589_v31  ;;  %v598_v39 = vpack.c.bf16 %v213_v38, %v212_v37  ;;  %v215_v41 = vld [vmem:[#allocation2 + $0xc8] sm:$0xff]  ;;  %v216_v43 = vld [vmem:[#allocation2 + $0xd0] sm:$0xff]  ;;  %v217_v44 = vld [vmem:[#allocation2 + $0xd8] sm:$0xff] }
  0x1d   :  { %570 = vmatprep.subr.bf16.mxu1 %v671_v1  ;;  %591 = vmatprep.subr.bf16.mxu0 %v671_v1  ;;  %v601_v42 = vpack.c.bf16 %v215_v41, %v214_v40  ;;  %v604_v45 = vpack.c.bf16 %v217_v44, %v216_v43  ;;  %v218_v46 = vld [vmem:[#allocation2 + $0xe0] sm:$0xff]  ;;  %v219_v47 = vld [vmem:[#allocation2 + $0xe8] sm:$0xff]  ;;  %v220_v54 = vld [vmem:[#allocation2 + $0xf0] sm:$0xff] }
  0x1e   :  { %v607_v48 = vpack.c.bf16 %v219_v47, %v218_v46  ;;  %v396_v49 = vld [vmem:[%s766_s3] ss:$0 sm:$0xff]  ;;  %v221_v55 = vld [vmem:[#allocation2 + $0xf8] sm:$0xff]  ;;  %v300_v58 = vld [vmem:[#allocation2 + $0x108] sm:$0xff] }
  0x1f   :  { %v610_v56 = vpack.c.bf16 %v221_v55, %v220_v54  ;;  %v299_v57 = vld [vmem:[#allocation2 + $0x100] sm:$0xff]  ;;  %v301_v59 = vld [vmem:[#allocation2 + $0x110] sm:$0xff]  ;;  %v302_v61 = vld [vmem:[#allocation2 + $0x118] sm:$0xff] }
  0x20   :  { %572 = vmatpush3.bf16.msra.mxu1 %v571_v12  ;;  %593 = vmatpush3.bf16.msra.mxu0 %v592_v33  ;;  %v613_v60 = vpack.c.bf16 %v300_v58, %v299_v57  ;;  %v616_v62 = vpack.c.bf16 %v302_v61, %v301_v59  ;;  %v303_v63 = vld [vmem:[#allocation2 + $0x120] sm:$0xff]  ;;  %v304_v2 = vld [vmem:[#allocation2 + $0x128] sm:$0xff]  ;;  %v306_v4 = vld [vmem:[#allocation2 + $0x138] sm:$0xff] }
  0x21   :  { %573 = vmatprep.subr.bf16.mxu1 %v671_v1  ;;  %594 = vmatprep.subr.bf16.mxu0 %v671_v1  ;;  %v619_v3 = vpack.c.bf16 %v304_v2, %v303_v63  ;;  %v307_v6 = vld [vmem:[#allocation2 + $0x140] sm:$0xff]  ;;  %v308_v7 = vld [vmem:[#allocation2 + $0x148] sm:$0xff]  ;;  %v309_v9 = vld [vmem:[#allocation2 + $0x150] sm:$0xff] }
  0x22   :  { %v625_v8 = vpack.c.bf16 %v308_v7, %v307_v6  ;;  %v310_v10 = vld [vmem:[#allocation2 + $0x158] sm:$0xff]  ;;  %v311_v12 = vld [vmem:[#allocation2 + $0x160] sm:$0xff]  ;;  %v312_v13 = vld [vmem:[#allocation2 + $0x168] sm:$0xff] }
  0x23   :  { %v628_v11 = vpack.c.bf16 %v310_v10, %v309_v9  ;;  %v631_v14 = vpack.c.bf16 %v312_v13, %v311_v12  ;;  %v313_v20 = vld [vmem:[#allocation2 + $0x170] sm:$0xff]  ;;  %v399_v23 = vld [vmem:[%s766_s3 + $0x2] ss:$0 sm:$0xff] }
  0x24   :  { %575 = vmatpush3.bf16.msra.mxu1 %v574_v15  ;;  %596 = vmatpush3.bf16.msra.mxu0 %v595_v36  ;;  %v398_v15 = vld [vmem:[%s766_s3 + $0x1] ss:$0 sm:$0xff] }
  0x25   :  { %576 = vmatprep.subr.bf16.mxu1 %v671_v1  ;;  %597 = vmatprep.subr.bf16.mxu0 %v671_v1 }
  0x28   :  { %578 = vmatpush3.bf16.msra.mxu1 %v577_v18  ;;  %599 = vmatpush3.bf16.msra.mxu0 %v598_v39 }
  0x29   :  { %579 = vmatprep.subr.bf16.mxu1 %v671_v1  ;;  %600 = vmatprep.subr.bf16.mxu0 %v671_v1 }
  0x2c   :  { %581 = vmatpush3.bf16.msra.mxu1 %v580_v21  ;;  %602 = vmatpush3.bf16.msra.mxu0 %v601_v42  ;;  %v314_v21 = vld [vmem:[#allocation2 + $0x178] sm:$0xff] }
  0x2d   :  { %582 = vmatprep.subr.bf16.mxu1 %v671_v1  ;;  %603 = vmatprep.subr.bf16.mxu0 %v671_v1  ;;  %v634_v22 = vpack.c.bf16 %v314_v21, %v313_v20 }
  0x30   :  { %584 = vmatpush3.bf16.msra.mxu1 %v583_v24  ;;  %605 = vmatpush3.bf16.msra.mxu0 %v604_v45 }
  0x31   :  { %585 = vmatprep.subr.bf16.mxu1 %v671_v1  ;;  %606 = vmatprep.subr.bf16.mxu0 %v671_v1 }
  0x34   :  { %587 = vmatpush3.bf16.msra.mxu1 %v586_v27  ;;  %608 = vmatpush3.bf16.msra.mxu0 %v607_v48  ;;  %v400_v27 = vld [vmem:[%s766_s3 + $0x3] ss:$0 sm:$0xff] }
  0x35   :  { %612 = vmatprep.subr.bf16.mxu1 %v671_v1  ;;  %609 = vmatprep.subr.bf16.mxu0 %v671_v1 }
  0x38   :  { %611 = vmatpush3.bf16.msra.mxu0 %v610_v56 }
  0xe9   :  { %v108_v50 = vpop.f32.mrb[0].mxu0 }
  0xea   :  { %v109_v51 = vadd.f32 %v396_v49, %v108_v50  ;;  %v458_v52 = vpop.f32.mrb[1].mxu0 }
  0xec   :  { %v112_v53 = vmax.f32 %v109_v51, 0.0 }
  0xee   :  { %492 = vmatmul.mubr.f32.vlgmr.msra.gmra.mrb[0].mxu1 %v112_v53 }
  0xef   :  { %561 = vmatprep.mubr.msk.f32.mxu1 %vm670_vm0, %v669_v0  ;;  %614 = vmatpush3.bf16.msra.mxu1 %v613_v60  ;;  %v305_v0 = vld [vmem:[#allocation2 + $0x130] sm:$0xff] }
  0xf0   :  { %615 = vmatprep.subr.bf16.mxu1 %v671_v1  ;;  %v622_v5 = vpack.c.bf16 %v306_v4, %v305_v0 }
  0xf3   :  { %617 = vmatpush3.bf16.msra.mxu1 %v616_v62 }
  0xf4   :  { %618 = vmatprep.subr.bf16.mxu1 %v671_v1 }
  0xf7   :  { %620 = vmatpush3.bf16.msra.mxu1 %v619_v3 }
  0xf8   :  { %621 = vmatprep.subr.bf16.mxu1 %v671_v1 }
  0xfb   :  { %623 = vmatpush3.bf16.msra.mxu1 %v622_v5 }
  0xfc   :  { %624 = vmatprep.subr.bf16.mxu1 %v671_v1 }
  0xff   :  { %626 = vmatpush3.bf16.msra.mxu1 %v625_v8 }
 0x100   :  { %627 = vmatprep.subr.bf16.mxu1 %v671_v1 }
 0x103   :  { %629 = vmatpush3.bf16.msra.mxu1 %v628_v11 }
 0x104   :  { %630 = vmatprep.subr.bf16.mxu1 %v671_v1 }
 0x107   :  { %632 = vmatpush3.bf16.msra.mxu1 %v631_v14 }
 0x108   :  { %633 = vmatprep.subr.bf16.mxu1 %v671_v1 }
 0x10b   :  { %635 = vmatpush3.bf16.msra.mxu1 %v634_v22 }
 0x1c1   :  { %v200_v16 = vpop.f32.mrb[0].mxu1 }
 0x1c2   :  { %v201_v17 = vadd.f32 %v398_v15, %v200_v16  ;;  %v493_v18 = vpop.f32.mrb[1].mxu1 }
 0x1c4   :  { %v204_v19 = vmax.f32 %v201_v17, 0.0 }
 0x1c6   :  { %527 = vmatmul.mubr.f32.vlgmr.msra.gmra.mrb[2].mxu0 %v204_v19 }
 0x299   :  { %v293_v24 = vpop.f32.mrb[2].mxu0 }
 0x29a   :  { %v294_v25 = vadd.f32 %v399_v23, %v293_v24  ;;  %v528_v1 = vpop.f32.mrb[3].mxu0 }
 0x29c   :  { %v297_v26 = vmax.f32 %v294_v25, 0.0 }
 0x29e   :  { %562 = vmatmul.mubr.f32.vlgmr.msra.gmra.mrb[2].mxu1 %v297_v26 }
 0x371   :  { %v386_v28 = vpop.f32.mrb[2].mxu1 }
 0x372   :  { %v387_v29 = vadd.f32 %v400_v27, %v386_v28  ;;  %v563_v30 = vpop.f32.mrb[3].mxu1 }
 0x374   :  { %390 = vst [vmem:[%s767_s4] sm:$0xff] %v387_v29 }
 0x375   :  { %395 = vsyncpa [#allocation3], 1 }

</bundles_post_ra>
